<compile_context>
chip_gen: v6e
topology: v6e:2x2x1
jax: 0.10.0
libtpu: 0.0.40
codegen_flags: <defaults>
</compile_context>

<pallas_src>
import functools

import jax
import jax.numpy as jnp
from jax.experimental import pallas as pl
from jax.experimental.pallas import tpu as pltpu

LANES = 128  # TPU vreg lane width


def _round_up(x, m):
    return ((x + m - 1) // m) * m


def critic_kernel(s_ref, a_ref, w_ref, c_ref, o_ref, *,
                  hidden, P, SB, ni, na, B, TB, ni8, na8, r_wa, r_w1, r_w2):
    """One batch tile of TB = P*SB rows (P lane-packed sub-tiles of SB rows).

    s_ref: (TB, ni) f32    a_ref: (TB, na) f32
    w_ref: (rows, W) bf16 block-diagonal weight slab (VMEM resident)
    c_ref: (8, W)  f32 biases + final-layer weight row (VMEM resident)
    o_ref: (TB, 1) f32 q values
    """
    H = hidden
    H2 = 2 * H
    W = P * H2
    f32 = jnp.float32
    bf16 = jnp.bfloat16

    # Biases / final-layer row: single (8, W) load, sliced in-register.
    consts = c_ref[...]
    b_in = consts[0:1, :]        # cat(bc, ba) per band
    b1 = consts[1:2, :]          # b1 per band
    b2 = consts[2:3, :]          # b2 per band (cols H:2H of each band are 0)
    w3 = consts[3:4, :]          # w3 per band (cols H:2H of each band are 0)
    b3 = consts[4:5, 0:1]        # (1, 1)

    s = s_ref[...]
    a = a_ref[...]
    if B % TB != 0:
        # Ragged last tile: zero invalid rows so block-diagonal matmuls cannot
        # propagate NaN/Inf garbage from uninitialised VMEM into valid bands.
        row = jax.lax.broadcasted_iota(jnp.int32, (TB, 1), 0) + pl.program_id(0) * TB
        valid = row < B
        s = jnp.where(valid, s, 0.0)
        a = jnp.where(valid, a, 0.0)
    s = s.astype(bf16)
    a = a.astype(bf16)

    # Layer 0 + concat: sub-tile p dots against weights padded into its column
    # band [p*2H, (p+1)*2H); summing over p yields the lane-packed cat(x, y).
    acc = jnp.zeros((SB, W), f32)
    for p in range(P):
        sp = s[p * SB:(p + 1) * SB, :]
        ap = a[p * SB:(p + 1) * SB, :]
        ws = w_ref[p * ni8:p * ni8 + ni, :]                     # (ni, W) bf16
        wa = w_ref[r_wa + p * na8:r_wa + p * na8 + na, :]       # (na, W) bf16
        acc = acc + jnp.dot(sp, ws, preferred_element_type=f32)
        acc = acc + jnp.dot(ap, wa, preferred_element_type=f32)
    h = jnp.maximum(acc + b_in, 0.0)                            # net[0] ReLU

    # net[1] Linear(2H, 2H) + net[2] ReLU, block-diagonal over the P bands.
    w1 = w_ref[r_w1:r_w1 + W, :]
    h = jnp.maximum(jnp.dot(h.astype(bf16), w1, preferred_element_type=f32) + b1, 0.0)

    # net[3] Linear(2H, H) + net[4] ReLU, carried at band width 2H (upper half stays 0).
    w2 = w_ref[r_w2:r_w2 + W, :]
    h = jnp.maximum(jnp.dot(h.astype(bf16), w2, preferred_element_type=f32) + b2, 0.0)

    # net[5] Linear(H, 1): f32 VPU multiply + per-band lane reduction.
    hw = h * w3
    for p in range(P):
        qp = jnp.sum(hw[:, p * H2:(p + 1) * H2], axis=-1, keepdims=True) + b3
        o_ref[p * SB:(p + 1) * SB, :] = qp.astype(o_ref.dtype)
    # TODO(synk): a lane-dense (1, TB) output would avoid the masked 1-lane
    # stores above but needs an in-kernel (SB,1)->(1,SB) relayout; kept (B, 1)
    # to match the module's output contract (small fraction of kernel time).


def pack_critic_params(params):
    """One-time prep: pack PyTorch (out, in) weights into
    (a) a bf16 P-way block-diagonal weight slab of lane width W = P*2H, and
    (b) an (8, W) f32 constants block (biases + final-layer weight row)."""
    f32 = jnp.float32
    H = params["bc"].shape[-1]
    H2 = 2 * H
    ni = params["wc"].shape[-1]
    na = params["wa"].shape[-1]
    P = max(1, LANES // H2)          # batch sub-tiles packed side-by-side in lanes
    W = P * H2
    ni8 = _round_up(ni, 8)
    na8 = _round_up(na, 8)
    r_wa = P * ni8
    r_w1 = r_wa + P * na8
    r_w2 = r_w1 + W
    rows = r_w2 + W

    wslab = jnp.zeros((rows, W), f32)
    consts = jnp.zeros((8, W), f32)
    for p in range(P):
        c0 = p * H2
        wslab = wslab.at[p * ni8:p * ni8 + ni, c0:c0 + H].set(params["wc"].T.astype(f32))
        wslab = wslab.at[r_wa + p * na8:r_wa + p * na8 + na, c0 + H:c0 + H2].set(
            params["wa"].T.astype(f32))
        wslab = wslab.at[r_w1 + c0:r_w1 + c0 + H2, c0:c0 + H2].set(params["w1"].T.astype(f32))
        wslab = wslab.at[r_w2 + c0:r_w2 + c0 + H2, c0:c0 + H].set(params["w2"].T.astype(f32))
        consts = consts.at[0, c0:c0 + H].set(params["bc"].astype(f32))
        consts = consts.at[0, c0 + H:c0 + H2].set(params["ba"].astype(f32))
        consts = consts.at[1, c0:c0 + H2].set(params["b1"].astype(f32))
        consts = consts.at[2, c0:c0 + H].set(params["b2"].astype(f32))
        consts = consts.at[3, c0:c0 + H].set(params["w3"][0].astype(f32))
    consts = consts.at[4, :].set(jnp.asarray(params["b3"][0], f32))

    return dict(wslab=wslab.astype(jnp.bfloat16), consts=consts,
                hidden=H, P=P, ni=ni, na=na, ni8=ni8, na8=na8,
                r_wa=r_wa, r_w1=r_w1, r_w2=r_w2)


def _default_block_rows(B, P):
    """Rows per grid step: multiple of 8*P, capped at 256 (v5e regfile/VMEM),
    and >= 2 grid steps once B >= 128 so "parallel" shards across v7x's TCs."""
    unit = 8 * P
    if B >= 128:
        tb = min(256, (B // 2 // unit) * unit)
        return max(tb, unit)
    return _round_up(B, unit)


def critic_forward(state, action, packed, *, block_rows=None):
    """state: (B, num_inputs), action: (B, action_dim) -> (B, 1) f32 Q values."""
    H = packed["hidden"]
    P = packed["P"]
    ni = packed["ni"]
    na = packed["na"]
    wslab = packed["wslab"]
    consts = packed["consts"]
    B = state.shape[0]
    assert state.shape == (B, ni) and action.shape == (B, na)

    if block_rows is None:
        block_rows = _default_block_rows(B, P)
    assert block_rows % (8 * P) == 0, "block_rows must be a multiple of 8*P"
    TB = block_rows
    SB = TB // P

    kernel = functools.partial(
        critic_kernel, hidden=H, P=P, SB=SB, ni=ni, na=na, B=B, TB=TB,
        ni8=packed["ni8"], na8=packed["na8"],
        r_wa=packed["r_wa"], r_w1=packed["r_w1"], r_w2=packed["r_w2"])

    return pl.pallas_call(
        kernel,
        out_shape=jax.ShapeDtypeStruct((B, 1), jnp.float32),
        grid=(pl.cdiv(B, TB),),
        in_specs=[
            pl.BlockSpec((TB, ni), lambda i: (i, 0)),       # state rows: per-tile DMA
            pl.BlockSpec((TB, na), lambda i: (i, 0)),       # action rows: per-tile DMA
            pl.BlockSpec(wslab.shape, lambda i: (0, 0)),    # bf16 weight slab: VMEM resident
            pl.BlockSpec(consts.shape, lambda i: (0, 0)),   # f32 biases: VMEM resident
        ],
        out_specs=pl.BlockSpec((TB, 1), lambda i: (i, 0)),
        compiler_params=pltpu.CompilerParams(
            dimension_semantics=("parallel",)),             # batch tiles across TCs (v7x)
    )(state, action, wslab, consts)


def init_params(key, num_inputs, action_dim, hidden):
    """Deterministic PyTorch-style uniform(-1/sqrt(fan_in), 1/sqrt(fan_in)) init."""
    def linear(k, fan_in, fan_out):
        kw, kb = jax.random.split(k)
        bound = 1.0 / jnp.sqrt(jnp.float32(fan_in))
        w = jax.random.uniform(kw, (fan_out, fan_in), jnp.float32, -bound, bound)
        b = jax.random.uniform(kb, (fan_out,), jnp.float32, -bound, bound)
        return w, b

    ks = jax.random.split(key, 5)
    wc, bc = linear(ks[0], num_inputs, hidden)
    wa, ba = linear(ks[1], action_dim, hidden)
    w1, b1 = linear(ks[2], hidden * 2, hidden * 2)
    w2, b2 = linear(ks[3], hidden * 2, hidden)
    w3, b3 = linear(ks[4], hidden, 1)
    return dict(wc=wc, bc=bc, wa=wa, ba=ba, w1=w1, b1=b1, w2=w2, b2=b2, w3=w3, b3=b3)


def critic_reference(state, action, p):
    """Pure-JAX f32 reference mirroring the PyTorch forward exactly."""
    x = state @ p["wc"].T + p["bc"]
    y = action @ p["wa"].T + p["ba"]
    h = jnp.maximum(jnp.concatenate([x, y], axis=-1), 0.0)
    h = jnp.maximum(h @ p["w1"].T + p["b1"], 0.0)
    h = jnp.maximum(h @ p["w2"].T + p["b2"], 0.0)
    return h @ p["w3"].T + p["b3"]


def critic_reference_bf16ops(state, action, p):
    """Reference using the kernel's precision recipe: bf16 matmul operands,
    f32 accumulation and f32 biases; final Linear(H, 1) in f32."""
    bf = lambda t: t.astype(jnp.bfloat16)
    dot = lambda a, b: jnp.dot(bf(a), bf(b), preferred_element_type=jnp.float32)
    x = dot(state, p["wc"].T) + p["bc"]
    y = dot(action, p["wa"].T) + p["ba"]
    h = jnp.maximum(jnp.concatenate([x, y], axis=-1), 0.0)
    h = jnp.maximum(dot(h, p["w1"].T) + p["b1"], 0.0)
    h = jnp.maximum(dot(h, p["w2"].T) + p["b2"], 0.0)
    return h @ p["w3"].T + p["b3"]


if __name__ == "__main__":
    # LunarLanderContinuous-like dims: state=8, action=2; hidden=32, batch=8.
    B, NUM_INPUTS, ACTION_DIM, HIDDEN = 8, 8, 2, 32

    key = jax.random.PRNGKey(0)
    k_state, k_action, k_params = jax.random.split(key, 3)
    state = jax.random.normal(k_state, (B, NUM_INPUTS), jnp.float32)
    action = jax.random.uniform(k_action, (B, ACTION_DIM), jnp.float32, -1.0, 1.0)
    params = init_params(k_params, NUM_INPUTS, ACTION_DIM, HIDDEN)

    packed = pack_critic_params(params)   # one-time weight prep (off the hot path)
    packed = {k: (jax.block_until_ready(v) if isinstance(v, jax.Array) else v)
              for k, v in packed.items()}

    q = critic_forward(state, action, packed)
    q = jax.block_until_ready(q)

    assert q.shape == (B, 1)
    # Tight check vs a reference that uses the kernel's exact precision recipe.
    q_bf = critic_reference_bf16ops(state, action, params)
    assert jnp.allclose(q, q_bf, atol=1e-4, rtol=1e-4), "mismatch vs bf16-operand reference"
    # Loose check vs the exact f32 forward (difference = bf16 operand rounding).
    q_f32 = critic_reference(state, action, params)
    assert jnp.allclose(q, q_f32, atol=3e-2, rtol=3e-2), "mismatch vs f32 reference"

    print("KERNEL_OK")
</pallas_src>

<mosaic_0001>
module attributes {stable_mosaic.version = 11 : i64} {
  func.func @critic_kernel(%arg0: i32, %arg1: memref<16x8xf32, #tpu.memory_space<vmem>>, %arg2: memref<16x2xf32, #tpu.memory_space<vmem>>, %arg3: memref<288x128xbf16, #tpu.memory_space<vmem>>, %arg4: memref<8x128xf32, #tpu.memory_space<vmem>>, %arg5: memref<16x1xf32, #tpu.memory_space<vmem>>) attributes {dimension_semantics = [#tpu.dimension_semantics<parallel>], iteration_bounds = array<i64: 1>, scalar_prefetch = 0 : i64, scratch_operands = 0 : i64, tpu.core_type = #tpu.core_type<tc>, window_params = [{transform_indices = @transform_0, window_bounds = array<i64: 16, 8>}, {transform_indices = @transform_1, window_bounds = array<i64: 16, 2>}, {pipeline_mode = #tpu.pipeline_mode<synchronous>, transform_indices = @transform_2, window_bounds = array<i64: 288, 128>}, {pipeline_mode = #tpu.pipeline_mode<synchronous>, transform_indices = @transform_3, window_bounds = array<i64: 8, 128>}, {transform_indices = @transform_4, window_bounds = array<i64: 16, 1>}]} {
    %c0 = arith.constant 0 : index
    %c0_0 = arith.constant 0 : index
    %0 = vector.load %arg4[%c0, %c0_0] : memref<8x128xf32, #tpu.memory_space<vmem>>, vector<8x128xf32>
    %1 = vector.extract_strided_slice %0 {offsets = [0, 0], sizes = [1, 128], strides = [1, 1]} : vector<8x128xf32> to vector<1x128xf32>
    %2 = vector.extract_strided_slice %0 {offsets = [1, 0], sizes = [1, 128], strides = [1, 1]} : vector<8x128xf32> to vector<1x128xf32>
    %3 = vector.extract_strided_slice %0 {offsets = [2, 0], sizes = [1, 128], strides = [1, 1]} : vector<8x128xf32> to vector<1x128xf32>
    %4 = vector.extract_strided_slice %0 {offsets = [3, 0], sizes = [1, 128], strides = [1, 1]} : vector<8x128xf32> to vector<1x128xf32>
    %5 = vector.extract_strided_slice %0 {offsets = [4, 0], sizes = [1, 1], strides = [1, 1]} : vector<8x128xf32> to vector<1x1xf32>
    %c0_1 = arith.constant 0 : index
    %c0_2 = arith.constant 0 : index
    %6 = vector.load %arg1[%c0_1, %c0_2] : memref<16x8xf32, #tpu.memory_space<vmem>>, vector<16x8xf32>
    %c0_3 = arith.constant 0 : index
    %c0_4 = arith.constant 0 : index
    %7 = vector.load %arg2[%c0_3, %c0_4] : memref<16x2xf32, #tpu.memory_space<vmem>>, vector<16x2xf32>
    %8 = tpu.iota {dimensions = array<i32: 0>} : vector<16x1xi32>
    %c16_i32 = arith.constant 16 : i32
    %9 = arith.muli %arg0, %c16_i32 : i32
    %10 = vector.broadcast %9 : i32 to vector<16x1xi32>
    %11 = arith.addi %8, %10 : vector<16x1xi32>
    %c8_i32 = arith.constant 8 : i32
    %12 = vector.broadcast %c8_i32 : i32 to vector<16x1xi32>
    %13 = arith.cmpi slt, %11, %12 : vector<16x1xi32>
    %cst = arith.constant 0.000000e+00 : f32
    %14 = vector.shape_cast %13 : vector<16x1xi1> to vector<16x1xi1>
    %15 = vector.broadcast %14 : vector<16x1xi1> to vector<16x8xi1>
    %16 = vector.broadcast %cst : f32 to vector<16x8xf32>
    %17 = arith.select %15, %6, %16 : vector<16x8xi1>, vector<16x8xf32>
    %cst_5 = arith.constant 0.000000e+00 : f32
    %18 = vector.shape_cast %13 : vector<16x1xi1> to vector<16x1xi1>
    %19 = vector.broadcast %18 : vector<16x1xi1> to vector<16x2xi1>
    %20 = vector.broadcast %cst_5 : f32 to vector<16x2xf32>
    %21 = arith.select %19, %7, %20 : vector<16x2xi1>, vector<16x2xf32>
    %22 = arith.truncf %17 : vector<16x8xf32> to vector<16x8xbf16>
    %23 = arith.truncf %21 : vector<16x2xf32> to vector<16x2xbf16>
    %cst_6 = arith.constant 0.000000e+00 : f32
    %24 = vector.broadcast %cst_6 : f32 to vector<8x128xf32>
    %25 = vector.extract_strided_slice %22 {offsets = [0, 0], sizes = [8, 8], strides = [1, 1]} : vector<16x8xbf16> to vector<8x8xbf16>
    %26 = vector.extract_strided_slice %23 {offsets = [0, 0], sizes = [8, 2], strides = [1, 1]} : vector<16x2xbf16> to vector<8x2xbf16>
    %c0_7 = arith.constant 0 : index
    %c0_8 = arith.constant 0 : index
    %27 = vector.load %arg3[%c0_7, %c0_8] : memref<288x128xbf16, #tpu.memory_space<vmem>>, vector<8x128xbf16>
    %c16 = arith.constant 16 : index
    %c0_9 = arith.constant 0 : index
    %28 = vector.load %arg3[%c16, %c0_9] : memref<288x128xbf16, #tpu.memory_space<vmem>>, vector<2x128xbf16>
    %cst_10 = arith.constant dense<0.000000e+00> : vector<8x128xf32>
    %29 = tpu.matmul %25, %27, %cst_10 {dimension_numbers = #tpu.dot_dimension_numbers<[1], [0], [0], [1], [0, 0, 1, 1], [], []>} : vector<8x8xbf16>, vector<8x128xbf16>, vector<8x128xf32> -> vector<8x128xf32>
    %30 = arith.addf %24, %29 : vector<8x128xf32>
    %cst_11 = arith.constant dense<0.000000e+00> : vector<8x128xf32>
    %31 = tpu.matmul %26, %28, %cst_11 {dimension_numbers = #tpu.dot_dimension_numbers<[1], [0], [0], [1], [0, 0, 1, 1], [], []>} : vector<8x2xbf16>, vector<2x128xbf16>, vector<8x128xf32> -> vector<8x128xf32>
    %32 = arith.addf %30, %31 : vector<8x128xf32>
    %33 = vector.extract_strided_slice %22 {offsets = [8, 0], sizes = [8, 8], strides = [1, 1]} : vector<16x8xbf16> to vector<8x8xbf16>
    %34 = vector.extract_strided_slice %23 {offsets = [8, 0], sizes = [8, 2], strides = [1, 1]} : vector<16x2xbf16> to vector<8x2xbf16>
    %c8 = arith.constant 8 : index
    %c0_12 = arith.constant 0 : index
    %35 = vector.load %arg3[%c8, %c0_12] : memref<288x128xbf16, #tpu.memory_space<vmem>>, vector<8x128xbf16>
    %c24 = arith.constant 24 : index
    %c0_13 = arith.constant 0 : index
    %36 = vector.load %arg3[%c24, %c0_13] : memref<288x128xbf16, #tpu.memory_space<vmem>>, vector<2x128xbf16>
    %cst_14 = arith.constant dense<0.000000e+00> : vector<8x128xf32>
    %37 = tpu.matmul %33, %35, %cst_14 {dimension_numbers = #tpu.dot_dimension_numbers<[1], [0], [0], [1], [0, 0, 1, 1], [], []>} : vector<8x8xbf16>, vector<8x128xbf16>, vector<8x128xf32> -> vector<8x128xf32>
    %38 = arith.addf %32, %37 : vector<8x128xf32>
    %cst_15 = arith.constant dense<0.000000e+00> : vector<8x128xf32>
    %39 = tpu.matmul %34, %36, %cst_15 {dimension_numbers = #tpu.dot_dimension_numbers<[1], [0], [0], [1], [0, 0, 1, 1], [], []>} : vector<8x2xbf16>, vector<2x128xbf16>, vector<8x128xf32> -> vector<8x128xf32>
    %40 = arith.addf %38, %39 : vector<8x128xf32>
    %41 = vector.broadcast %1 : vector<1x128xf32> to vector<8x128xf32>
    %42 = arith.addf %40, %41 : vector<8x128xf32>
    %cst_16 = arith.constant 0.000000e+00 : f32
    %43 = vector.broadcast %cst_16 : f32 to vector<8x128xf32>
    %44 = arith.maximumf %42, %43 : vector<8x128xf32>
    %c32 = arith.constant 32 : index
    %c0_17 = arith.constant 0 : index
    %45 = vector.load %arg3[%c32, %c0_17] : memref<288x128xbf16, #tpu.memory_space<vmem>>, vector<128x128xbf16>
    %46 = arith.truncf %44 : vector<8x128xf32> to vector<8x128xbf16>
    %cst_18 = arith.constant dense<0.000000e+00> : vector<8x128xf32>
    %47 = tpu.matmul %46, %45, %cst_18 {dimension_numbers = #tpu.dot_dimension_numbers<[1], [0], [0], [1], [0, 0, 1, 1], [], []>} : vector<8x128xbf16>, vector<128x128xbf16>, vector<8x128xf32> -> vector<8x128xf32>
    %48 = vector.broadcast %2 : vector<1x128xf32> to vector<8x128xf32>
    %49 = arith.addf %47, %48 : vector<8x128xf32>
    %cst_19 = arith.constant 0.000000e+00 : f32
    %50 = vector.broadcast %cst_19 : f32 to vector<8x128xf32>
    %51 = arith.maximumf %49, %50 : vector<8x128xf32>
    %c160 = arith.constant 160 : index
    %c0_20 = arith.constant 0 : index
    %52 = vector.load %arg3[%c160, %c0_20] : memref<288x128xbf16, #tpu.memory_space<vmem>>, vector<128x128xbf16>
    %53 = arith.truncf %51 : vector<8x128xf32> to vector<8x128xbf16>
    %cst_21 = arith.constant dense<0.000000e+00> : vector<8x128xf32>
    %54 = tpu.matmul %53, %52, %cst_21 {dimension_numbers = #tpu.dot_dimension_numbers<[1], [0], [0], [1], [0, 0, 1, 1], [], []>} : vector<8x128xbf16>, vector<128x128xbf16>, vector<8x128xf32> -> vector<8x128xf32>
    %55 = vector.broadcast %3 : vector<1x128xf32> to vector<8x128xf32>
    %56 = arith.addf %54, %55 : vector<8x128xf32>
    %cst_22 = arith.constant 0.000000e+00 : f32
    %57 = vector.broadcast %cst_22 : f32 to vector<8x128xf32>
    %58 = arith.maximumf %56, %57 : vector<8x128xf32>
    %59 = vector.broadcast %4 : vector<1x128xf32> to vector<8x128xf32>
    %60 = arith.mulf %58, %59 : vector<8x128xf32>
    %61 = vector.extract_strided_slice %60 {offsets = [0, 0], sizes = [8, 64], strides = [1, 1]} : vector<8x128xf32> to vector<8x64xf32>
    %cst_23 = arith.constant dense<0.000000e+00> : vector<8xf32>
    %62 = vector.multi_reduction <add>, %61, %cst_23 [1] : vector<8x64xf32> to vector<8xf32>
    %63 = vector.shape_cast %62 : vector<8xf32> to vector<8x1xf32>
    %64 = vector.broadcast %5 : vector<1x1xf32> to vector<8x1xf32>
    %65 = arith.addf %63, %64 : vector<8x1xf32>
    %c0_24 = arith.constant 0 : index
    %c0_25 = arith.constant 0 : index
    %66 = vector.load %arg5[%c0_24, %c0_25] : memref<16x1xf32, #tpu.memory_space<vmem>>, vector<8x1xf32>
    tpu.vector_store %arg5[%c0_24, %c0_25], %65 {strides = array<i32>} : memref<16x1xf32, #tpu.memory_space<vmem>>, vector<8x1xf32>,
    %67 = vector.extract_strided_slice %60 {offsets = [0, 64], sizes = [8, 64], strides = [1, 1]} : vector<8x128xf32> to vector<8x64xf32>
    %cst_26 = arith.constant dense<0.000000e+00> : vector<8xf32>
    %68 = vector.multi_reduction <add>, %67, %cst_26 [1] : vector<8x64xf32> to vector<8xf32>
    %69 = vector.shape_cast %68 : vector<8xf32> to vector<8x1xf32>
    %70 = vector.broadcast %5 : vector<1x1xf32> to vector<8x1xf32>
    %71 = arith.addf %69, %70 : vector<8x1xf32>
    %c8_27 = arith.constant 8 : index
    %c0_28 = arith.constant 0 : index
    %72 = vector.load %arg5[%c8_27, %c0_28] : memref<16x1xf32, #tpu.memory_space<vmem>>, vector<8x1xf32>
    tpu.vector_store %arg5[%c8_27, %c0_28], %71 {strides = array<i32>} : memref<16x1xf32, #tpu.memory_space<vmem>>, vector<8x1xf32>,
    return
  }
  func.func @transform_0(%arg0: i32) -> (i32, i32) {
    %c0_i32 = arith.constant 0 : i32
    %c0_i32_0 = arith.constant 0 : i32
    return %arg0, %c0_i32 : i32, i32
  }
  func.func @transform_1(%arg0: i32) -> (i32, i32) {
    %c0_i32 = arith.constant 0 : i32
    %c0_i32_0 = arith.constant 0 : i32
    return %arg0, %c0_i32 : i32, i32
  }
  func.func @transform_2(%arg0: i32) -> (i32, i32) {
    %c0_i32 = arith.constant 0 : i32
    %c0_i32_0 = arith.constant 0 : i32
    %c0_i32_1 = arith.constant 0 : i32
    return %c0_i32, %c0_i32_0 : i32, i32
  }
  func.func @transform_3(%arg0: i32) -> (i32, i32) {
    %c0_i32 = arith.constant 0 : i32
    %c0_i32_0 = arith.constant 0 : i32
    %c0_i32_1 = arith.constant 0 : i32
    return %c0_i32, %c0_i32_0 : i32, i32
  }
  func.func @transform_4(%arg0: i32) -> (i32, i32) {
    %c0_i32 = arith.constant 0 : i32
    %c0_i32_0 = arith.constant 0 : i32
    return %arg0, %c0_i32 : i32, i32
  }
}

</mosaic_0001>

<bundles_post_ra>
// kernel: tpu_custom_call.1
= control target key start
LH: loop header
LB: loop body
LE: loop exit
PB: predicated region body
PF: predicated region fallthrough
CT: control target
= control target key end

     0   :  { %9 = vsyncpa [#allocation3], 0  ;;  %s823_s0 = inlined_call_operand.vmem [shape: f32[8,8], index: 0, kind: input, shape index: {}]   ;;  %s824_s1 = inlined_call_operand.vmem [shape: f32[8,2], index: 1, kind: input, shape index: {}]   ;;  %s825_s2 = inlined_call_operand.hbm [shape: bf16[288,128], index: 2, kind: input, shape index: {}]   ;;  %s826_s3 = inlined_call_operand.hbm [shape: f32[8,128], index: 3, kind: input, shape index: {}]   ;;  %s827_s4 = inlined_call_operand.vmem [shape: f32[8,1], index: 4, kind: output, shape index: {}]  }
   0x1   :  { %10 = vsyncpa [#allocation5], 0  ;;  %s736_s15 = smov [#allocation2]  }
   0x2   :  { %s20_s16 = sshll.u32 %s736_s15, 4  ;;  %s21_s16 = int_to_ptr.vmem [resolvable:$true] %s20_s16 }
   0x3   :  { %s700_s17 = scalar_lea.vmem %s21_s16, 2304  ;;  %p705_p1 = scmp.lt.s32.totalorder %s21_s16, %s21_s16 }
   0x4   :  { %p701_p0 = scmp.ne.s32.totalorder %s21_s16, %s700_s17  ;;  %p706_p2 = scmp.lt.s32.totalorder %s700_s17, %s700_s17 }
   0x6   :  { %p707_p3 = por %p706_p2, %p705_p1 }
   0x8   :  { %p708_p4 = pnand %p707_p3, %p701_p0 }
   0xa   :  { %711 = shalt.err (!%p708_p4)
}
   0xb   :  { %s737_s18 = smov 64   ;;  %s738_s19 = smov 4  }
   0xc   :  { %26 = dma.hbm_to_vmem [thread:$0]  %s825_s2, 2304, %s21_s16, [#allocation3], %s737_s18, %s737_s18, %s738_s19  }
   0xd   :  { %s739_s22 = smov [#allocation4]  }
   0xe   :  { %s33_s23 = sshll.u32 %s739_s22, 4  ;;  %s34_s23 = int_to_ptr.vmem [resolvable:$true] %s33_s23 }
   0xf   :  { %s720_s24 = scalar_lea.vmem %s34_s23, 128  ;;  %p725_p6 = scmp.lt.s32.totalorder %s34_s23, %s34_s23 }
  0x10   :  { %p721_p5 = scmp.ne.s32.totalorder %s34_s23, %s720_s24  ;;  %p726_p7 = scmp.lt.s32.totalorder %s720_s24, %s720_s24 }
  0x12   :  { %p727_p8 = por %p726_p7, %p725_p6 }
  0x14   :  { %p728_p9 = pnand %p727_p8, %p721_p5 }
  0x16   :  { %731 = shalt.err (!%p728_p9)
}
  0x17   :  { %36 = dma.hbm_to_vmem [thread:$0]  %s826_s3, 128, %s34_s23, [#allocation5]  }
  0x18   :  { %732 = dma.done.wait [#allocation3], 2304  }
  0x19   :  { %733 = vsyncadd [#allocation3], 4294964992 }
  0x1a   :  { %734 = dma.done.wait [#allocation5], 128  }
  0x1b   :  { %735 = vsyncadd [#allocation5], 4294967168  ;;  %v740_v0 = vmov 0.0   ;;  %vm741_vm0 = vmmov 0   ;;  %vm74_vm1 = vcmask 1040384   ;;  %vm122_vm2 = vcmask 1043456  }
  0x1c   :  { %606 = vmatprep.subr.bf16.mxu0 %v740_v0  ;;  %612 = vmatprep.subr.bf16.mxu1 %v740_v0  ;;  %v69_v1 = vld [vmem:[#allocation2 + $0x8] sm:$0x1]  ;;  %v167_v2 = vld [vmem:[#allocation2 + $0xc] sm:$0x1]  ;;  %v68_v3 = vld [vmem:[#allocation2] sm:$0xf]  ;;  %v266_v29 = vlaneseq }
  0x1d   :  { %608 = vmatprep.mubr.msk.bf16.mxu0 %vm741_vm0, %v740_v0  ;;  %614 = vmatprep.mubr.msk.bf16.mxu1 %vm741_vm0, %v740_v0  ;;  %v76_v4 = vsel %vm74_vm1, %v69_v1, 0  ;;  %v124_v5 = vsel %vm122_vm2, %v68_v3, 0  ;;  %v166_v6 = vld [vmem:[#allocation2 + $0x4] sm:$0xf]  ;;  %vm70_vm3 = vcmask 15360   ;;  %vm118_vm4 = vcmask 64512  }
  0x1e   :  { %v47_v7 = vld [vmem:[%s824_s1] sm:$0xff]  ;;  %607 = vmatpush3.bf16.msra.mxu0 %v76_v4  ;;  %613 = vmatpush3.bf16.msra.mxu1 %v124_v5  ;;  %v223_v10 = vsel %vm74_vm1, %v167_v2, 0  ;;  %v174_v11 = vsel %vm122_vm2, %v166_v6, 0  ;;  %v676_v15 = vld [vmem:[#allocation2 + $0x48] sm:$0xff]   ;;  %v678_v17 = vld [vmem:[#allocation2 + $0x38] sm:$0xff]   ;;  %v267_v32 = vshrl.u32 %v266_v29, 7 }
  0x1f   :  { %v67_v8 = vpack.c.bf16 %v740_v0, %v47_v7  ;;  %v45_v9 = vld [vmem:[%s823_s0] sm:$0xff]  ;;  %618 = vmatprep.subr.bf16.mxu0 %v740_v0  ;;  %624 = vmatprep.subr.bf16.mxu1 %v740_v0  ;;  %v679_v18 = vld [vmem:[#allocation2 + $0x30] sm:$0xff]   ;;  %v680_v19 = vld [vmem:[#allocation2 + $0x28] sm:$0xff]   ;;  %vm497_vm5 = vcmask 523264   ;;  %vm506_vm6 = vcmask 7168  }
  0x20   :  { %v66_v12 = vpack.c.bf16 %v740_v0, %v45_v9  ;;  %v677_v16 = vld [vmem:[#allocation2 + $0x40] sm:$0xff]   ;;  %v682_v21 = vld [vmem:[#allocation2 + $0x18] sm:$0xff]   ;;  %v683_v22 = vld [vmem:[#allocation2 + $0x10] sm:$0xff]   ;;  %v268_v37 = vsub.s32 0, %v267_v32  ;;  %v291_v58 = vsub.s32 1, %v267_v32  ;;  %v401_v4 = vsub.s32 2, %v267_v32 }
  0x21   :  { %609 = vmatmul.mubr.msk.bf16.vlgmr.msra.gmra.mxu0 %vm70_vm3, %v67_v8  ;;  %v218_v13 = vrot.slane %v67_v8, 4  ;;  %v681_v20 = vld [vmem:[#allocation2 + $0x20] sm:$0xff]   ;;  %v684_v23 = vld [vmem:[#allocation2 + $0x88] sm:$0xff]   ;;  %v686_v25 = vld [vmem:[#allocation2 + $0x78] sm:$0xff]   ;;  %v494_v6 = vsub.s32 3, %v267_v32 }
  0x22   :  { %615 = vmatmul.mubr.msk.bf16.vlgmr.msra.gmra.mxu1 %vm118_vm4, %v66_v12  ;;  %v169_v14 = vrot.slane %v66_v12, 4  ;;  %619 = vmatpush3.bf16.msra.mxu0 %v174_v11  ;;  %v685_v24 = vld [vmem:[#allocation2 + $0x80] sm:$0xff]   ;;  %v687_v26 = vld [vmem:[#allocation2 + $0x70] sm:$0xff]   ;;  %v688_v27 = vld [vmem:[#allocation2 + $0x68] sm:$0xff]  }
  0x23   :  { %625 = vmatpush3.bf16.msra.mxu1 %v223_v10  ;;  %620 = vmatprep.mubr.msk.bf16.mxu0 %vm741_vm0, %v740_v0  ;;  %v689_v28 = vld [vmem:[#allocation2 + $0x60] sm:$0xff]   ;;  %v44_v40 = vld [vmem:[#allocation4] sm:$0xff]  ;;  %v690_v56 = vld [vmem:[#allocation2 + $0x58] sm:$0xff]  }
  0x24   :  { %626 = vmatprep.mubr.msk.bf16.mxu1 %vm741_vm0, %v740_v0  ;;  %630 = vmatprep.subr.bf16.mxu0 %v740_v0  ;;  %v269_v45 = vrot.slane %v44_v40, %v268_v37  ;;  %v691_v57 = vld [vmem:[#allocation2 + $0x50] sm:$0xff]   ;;  %v292_v59 = vrot.slane %v44_v40, %v291_v58  ;;  %v402_v5 = vrot.slane %v44_v40, %v401_v4 }
  0x25   :  { %650 = vmatprep.subr.bf16.mxu1 %v740_v0  ;;  %v495_v9 = vrot.slane %v44_v40, %v494_v6 }
  0x29   :  { %621 = vmatmul.mubr.msk.bf16.vlgmr.msra.gmra.mxu0 %vm118_vm4, %v169_v14 }
  0x2a   :  { %627 = vmatmul.mubr.msk.bf16.vlgmr.msra.gmra.mxu1 %vm70_vm3, %v218_v13  ;;  %631 = vmatpush3.bf16.msra.mxu0 %v676_v15 }
  0x2b   :  { %646 = vmatprep.mubr.msk.bf16.mxu0 %vm741_vm0, %v740_v0  ;;  %632 = vmatprep.subr.bf16.mxu0 %v740_v0 }
  0x2c   :  { %666 = vmatprep.mubr.msk.bf16.mxu1 %vm741_vm0, %v740_v0  ;;  %651 = vmatpush3.bf16.msra.mxu1 %v684_v23 }
  0x2d   :  { %652 = vmatprep.subr.bf16.mxu1 %v740_v0 }
  0x2e   :  { %633 = vmatpush3.bf16.msra.mxu0 %v677_v16 }
  0x2f   :  { %634 = vmatprep.subr.bf16.mxu0 %v740_v0 }
  0x30   :  { %653 = vmatpush3.bf16.msra.mxu1 %v685_v24 }
  0x31   :  { %654 = vmatprep.subr.bf16.mxu1 %v740_v0 }
  0x32   :  { %635 = vmatpush3.bf16.msra.mxu0 %v678_v17  ;;  %v503_v17 = vsub.s32 4, %v267_v32 }
  0x33   :  { %636 = vmatprep.subr.bf16.mxu0 %v740_v0 }
  0x34   :  { %655 = vmatpush3.bf16.msra.mxu1 %v686_v25 }
  0x35   :  { %656 = vmatprep.subr.bf16.mxu1 %v740_v0 }
  0x36   :  { %637 = vmatpush3.bf16.msra.mxu0 %v679_v18  ;;  %v504_v18 = vrot.slane %v44_v40, %v503_v17 }
  0x37   :  { %638 = vmatprep.subr.bf16.mxu0 %v740_v0 }
  0x38   :  { %657 = vmatpush3.bf16.msra.mxu1 %v687_v26 }
  0x39   :  { %658 = vmatprep.subr.bf16.mxu1 %v740_v0 }
  0x3a   :  { %639 = vmatpush3.bf16.msra.mxu0 %v680_v19 }
  0x3b   :  { %640 = vmatprep.subr.bf16.mxu0 %v740_v0 }
  0x3c   :  { %659 = vmatpush3.bf16.msra.mxu1 %v688_v27 }
  0x3d   :  { %660 = vmatprep.subr.bf16.mxu1 %v740_v0 }
  0x3e   :  { %641 = vmatpush3.bf16.msra.mxu0 %v681_v20 }
  0x3f   :  { %642 = vmatprep.subr.bf16.mxu0 %v740_v0 }
  0x40   :  { %661 = vmatpush3.bf16.msra.mxu1 %v689_v28 }
  0x41   :  { %662 = vmatprep.subr.bf16.mxu1 %v740_v0 }
  0x42   :  { %643 = vmatpush3.bf16.msra.mxu0 %v682_v21 }
  0x43   :  { %644 = vmatprep.subr.bf16.mxu0 %v740_v0 }
  0x44   :  { %663 = vmatpush3.bf16.msra.mxu1 %v690_v56 }
  0x45   :  { %664 = vmatprep.subr.bf16.mxu1 %v740_v0 }
  0x46   :  { %645 = vmatpush3.bf16.msra.mxu0 %v683_v22 }
  0x48   :  { %665 = vmatpush3.bf16.msra.mxu1 %v691_v57 }
  0xe1   :  { %v112_v30 = vpop.f32.mrf.mxu0 }
  0xe2   :  { %v160_v31 = vpop.f32.mrf.mxu1 }
  0xe3   :  { %v610_v33 = vpop.f32.mrf.mxu0  ;;  %v161_v41 = vadd.f32 %v160_v31, %v112_v30 }
  0xe4   :  { %v616_v34 = vpop.f32.mrf.mxu1 }
  0xe5   :  { %v115_v35 = vpop.f32.mrf.mxu0 }
  0xe6   :  { %v163_v36 = vpop.f32.mrf.mxu1 }
  0xe7   :  { %v611_v38 = vpop.f32.mrf.mxu0 }
  0xe8   :  { %v617_v39 = vpop.f32.mrf.mxu1 }
  0xe9   :  { %v210_v42 = vpop.f32.mrf.mxu0 }
  0xea   :  { %v259_v43 = vpop.f32.mrf.mxu1  ;;  %v216_v44 = vadd.f32 %v210_v42, %v161_v41 }
  0xeb   :  { %v622_v46 = vpop.f32.mrf.mxu0 }
  0xec   :  { %v628_v47 = vpop.f32.mrf.mxu1  ;;  %v265_v48 = vadd.f32 %v259_v43, %v216_v44 }
  0xed   :  { %v213_v49 = vpop.f32.mrf.mxu0 }
  0xee   :  { %v262_v50 = vpop.f32.mrf.mxu1  ;;  %v270_v51 = vadd.f32 %v269_v45, %v265_v48 }
  0xef   :  { %v623_v52 = vpop.f32.mrf.mxu0 }
  0xf0   :  { %v629_v53 = vpop.f32.mrf.mxu1  ;;  %v271_v54 = vmax.f32 %v270_v51, 0.0 }
  0xf2   :  { %v288_v55 = vpack.c.bf16 %v271_v54, %v271_v54 }
  0xf4   :  { %647 = vmatmul.mubr.bf16.vlgmr.msra.gmra.mxu0 %v288_v55 }
 0x1b4   :  { %v375_v60 = vpop.f32.mrf.mxu0 }
 0x1b5   :  { %v376_v61 = vadd.f32 %v375_v60, %v292_v59 }
 0x1b6   :  { %v648_v62 = vpop.f32.mrf.mxu0 }
 0x1b7   :  { %v381_v63 = vmax.f32 %v376_v61, 0.0 }
 0x1b8   :  { %v378_v1 = vpop.f32.mrf.mxu0 }
 0x1b9   :  { %v398_v2 = vpack.c.bf16 %v381_v63, %v381_v63 }
 0x1ba   :  { %v649_v3 = vpop.f32.mrf.mxu0 }
 0x1bb   :  { %667 = vmatmul.mubr.bf16.vlgmr.msra.gmra.mxu1 %v398_v2 }
 0x27b   :  { %v485_v7 = vpop.f32.mrf.mxu1 }
 0x27c   :  { %v486_v8 = vadd.f32 %v485_v7, %v402_v5 }
 0x27d   :  { %v668_v10 = vpop.f32.mrf.mxu1 }
 0x27e   :  { %v491_v0 = vmax.f32 %v486_v8, 0.0 }
 0x27f   :  { %v488_v11 = vpop.f32.mrf.mxu1 }
 0x280   :  { %v496_v12 = vmul.f32 %v495_v9, %v491_v0 }
 0x281   :  { %v669_v13 = vpop.f32.mrf.mxu1 }
 0x282   :  { %509 = vrot.lane.b32.xlu0 %v496_v12, %s737_s18  ;;  %v498_v14 = vsel %vm497_vm5, %v496_v12, 0.0 }
 0x2a1   :  { %499 = vadd.xlane.f32.xlu0 %v498_v14 }
 0x2f4   :  { %v510_v15 = vpop.permute.xlu0 %509 }
 0x2f5   :  { %v512_v16 = vsel %vm497_vm5, %v510_v15, 0.0 }
 0x2f6   :  { %513 = vadd.xlane.f32.xlu1 %v512_v16 }
 0x32a   :  { %v500_v19 = vpop.xlane.xlu0 %499 }
 0x32b   :  { %v505_v20 = vadd.f32 %v504_v18, %v500_v19 }
 0x32d   :  { %507 = vst.msk [vmem:[#allocation6] sm:$0xff] %vm506_vm6, %v505_v20 }
 0x334   :  { %v547_v21 = vld [vmem:[#allocation6] sm:$0xff] }
 0x335   :  { %548 = vst [vmem:[%s827_s4] sm:$0xff] %v547_v21 }
 0x37f   :  { %v514_v22 = vpop.xlane.xlu1 %513 }
 0x380   :  { %554 = vsyncpa [#allocation3], 1 }
 0x381   :  { %555 = vsyncpa [#allocation5], 1 }

</bundles_post_ra>
